<compile_context>
chip_gen: v6e
topology: v6e:2x2x1
jax: 0.10.0
libtpu: 0.0.40
codegen_flags: <defaults>
</compile_context>

<pallas_src>
import math

import jax
import jax.numpy as jnp
from jax.experimental import pallas as pl
from jax.experimental.pallas import tpu as pltpu

H1, H2, H3 = 512, 512, 256


def critic_kernel(x_ref,
                  w1_ref, b1_ref,
                  w2_ref, b2_ref,
                  w3_ref, b3_ref,
                  w4_ref, b4_ref,
                  out_ref):
    # x arrives f32; cast to bf16 in-kernel (free under the MXU).  Weights are
    # bf16, biases f32, accumulation f32.
    x = x_ref[...].astype(jnp.bfloat16)                          # (TB, S)

    h1 = jnp.dot(x, w1_ref[...], preferred_element_type=jnp.float32)
    h1 = jnp.maximum(h1 + b1_ref[...], 0.0)                      # (TB, 512) f32

    h2 = jnp.dot(h1.astype(jnp.bfloat16), w2_ref[...],
                 preferred_element_type=jnp.float32)
    h2 = jnp.maximum(h2 + b2_ref[...], 0.0)                      # (TB, 512) f32

    h3 = jnp.dot(h2.astype(jnp.bfloat16), w3_ref[...],
                 preferred_element_type=jnp.float32)
    h3 = jnp.maximum(h3 + b3_ref[...], 0.0)                      # (TB, 256) f32

    # Value head: VPU multiply + XLU cross-lane reduce; w4 is lane-dense
    # (1, 256).  Result is written as a lane-dense (1, TB) row.
    w4 = w4_ref[...].astype(jnp.float32)                         # (1, 256)
    v = jnp.sum(h3 * w4, axis=-1)                                # (TB,)
    out_ref[...] = (v[None, :] + b4_ref[...]).astype(out_ref.dtype)   # (1, TB)


def _round_up(n, m):
    return ((n + m - 1) // m) * m


def critic_forward(x, params):
    """x: (B, state_space) f32 -> (B, 1) f32 value estimates."""
    (w1, b1), (w2, b2), (w3, b3), (w4, b4) = params
    B, S = x.shape

    # Batch tiling:
    #  * latency path (B <= 256): a single tile, rounded to 16 rows for bf16
    #    sublane packing;
    #  * rollout path: tiles of 256..2048 rows, chosen so the grid has >= 2
    #    steps (engages both v7x TensorCores) while keeping per-tile MXU work
    #    well above the ~0.35 us/step pipeline overhead.
    if B <= 256:
        TB = max(_round_up(B, 16), 16)
        Bp = TB
    else:
        TB = min(2048, max(256, _round_up((B + 1) // 2, 256)))
        Bp = _round_up(B, TB)
    if Bp != B:
        x = jnp.pad(x, ((0, Bp - B), (0, 0)))
    num_tiles = Bp // TB
    grid = (num_tiles,)

    # Weights/biases: whole array, block index constant across the batch grid
    # -> DMA'd once and kept resident in VMEM (~0.8 MB bf16 total).
    def resident(a):
        return pl.BlockSpec(a.shape, lambda i: (0,) * a.ndim)

    weight_bytes = sum(int(a.size) * a.dtype.itemsize
                       for a in (w1, b1, w2, b2, w3, b3, w4, b4))
    flops = 2 * Bp * (S * H1 + H1 * H2 + H2 * H3 + H3)
    bytes_accessed = weight_bytes + int(x.size) * x.dtype.itemsize + Bp * 4

    out = pl.pallas_call(
        critic_kernel,
        out_shape=jax.ShapeDtypeStruct((num_tiles, TB), jnp.float32),
        grid=grid,
        in_specs=[pl.BlockSpec((TB, S), lambda i: (i, 0)),
                  resident(w1), resident(b1),
                  resident(w2), resident(b2),
                  resident(w3), resident(b3),
                  resident(w4), resident(b4)],
        # Lane-dense (1, TB) output blocks -> unmasked vst + dense writeback.
        out_specs=pl.BlockSpec((1, TB), lambda i: (i, 0)),
        compiler_params=pltpu.CompilerParams(
            dimension_semantics=("parallel",)),
        cost_estimate=pl.CostEstimate(flops=flops, transcendentals=0,
                                      bytes_accessed=bytes_accessed),
    )(x, w1, b1, w2, b2, w3, b3, w4, b4)

    # (num_tiles, TB) -> (Bp, 1); row-major reshape preserves row order.
    return out.reshape(Bp, 1)[:B]


def init_params(key, state_space):
    """nn.Linear-style init; weights stored bf16, biases f32.

    fc1..fc3 weights stored as (in, out); value-head weight stored lane-dense
    as (1, 256) (same numbers as PyTorch's (out_features, in_features))."""
    params = []
    dims = [(state_space, H1), (H1, H2), (H2, H3)]
    for i, (fan_in, fan_out) in enumerate(dims):
        kw, kb = jax.random.split(jax.random.fold_in(key, i))
        bound = 1.0 / math.sqrt(fan_in)
        w = jax.random.uniform(kw, (fan_in, fan_out), jnp.float32, -bound, bound)
        b = jax.random.uniform(kb, (1, fan_out), jnp.float32, -bound, bound)
        params.append((w.astype(jnp.bfloat16), b))
    kw, kb = jax.random.split(jax.random.fold_in(key, 3))
    bound = 1.0 / math.sqrt(H3)
    w4 = jax.random.uniform(kw, (1, H3), jnp.float32, -bound, bound)
    b4 = jax.random.uniform(kb, (1, 1), jnp.float32, -bound, bound)
    params.append((w4.astype(jnp.bfloat16), b4))
    return params


def critic_reference(x, params):
    """Pure-JAX f32 reference (weights upcast from bf16)."""
    (w1, b1), (w2, b2), (w3, b3), (w4, b4) = params
    f32 = lambda a: a.astype(jnp.float32)
    h = jnp.maximum(x @ f32(w1) + b1, 0.0)
    h = jnp.maximum(h @ f32(w2) + b2, 0.0)
    h = jnp.maximum(h @ f32(w3) + b3, 0.0)
    return h @ f32(w4).T + b4


if __name__ == "__main__":
    key = jax.random.PRNGKey(0)
    state_space = 16   # CriticNet(state_space, action_space); critic uses state only

    k_x, k_p = jax.random.split(key)
    params = init_params(k_p, state_space)

    # Small per-step batch (single-tile latency path) and a >256 batch that
    # exercises the multi-tile rollout path, padding, and the lane-dense
    # output reshape.
    for batch in (4, 300):
        x = jax.random.normal(jax.random.fold_in(k_x, batch),
                              (batch, state_space), dtype=jnp.float32)
        out = jax.block_until_ready(critic_forward(x, params))
        ref = critic_reference(x, params)
        assert out.shape == (batch, 1), out.shape
        # bf16 weights/activations -> relaxed tolerance vs. the f32 reference.
        assert jnp.allclose(out, ref, atol=5e-2, rtol=5e-2), (
            float(jnp.max(jnp.abs(out - ref))))

    print("KERNEL_OK")
</pallas_src>

<mosaic_0001>
module attributes {stable_mosaic.version = 11 : i64} {
  func.func @critic_kernel(%arg0: i32, %arg1: memref<16x16xf32, #tpu.memory_space<vmem>>, %arg2: memref<16x512xbf16, #tpu.memory_space<vmem>>, %arg3: memref<1x512xf32, #tpu.memory_space<vmem>>, %arg4: memref<512x512xbf16, #tpu.memory_space<vmem>>, %arg5: memref<1x512xf32, #tpu.memory_space<vmem>>, %arg6: memref<512x256xbf16, #tpu.memory_space<vmem>>, %arg7: memref<1x256xf32, #tpu.memory_space<vmem>>, %arg8: memref<1x256xbf16, #tpu.memory_space<vmem>>, %arg9: memref<1x1xf32, #tpu.memory_space<vmem>>, %arg10: memref<1x16xf32, #tpu.memory_space<vmem>>) attributes {dimension_semantics = [#tpu.dimension_semantics<parallel>], iteration_bounds = array<i64: 1>, scalar_prefetch = 0 : i64, scratch_operands = 0 : i64, tpu.core_type = #tpu.core_type<tc>, window_params = [{transform_indices = @transform_0, window_bounds = array<i64: 16, 16>}, {pipeline_mode = #tpu.pipeline_mode<synchronous>, transform_indices = @transform_1, window_bounds = array<i64: 16, 512>}, {pipeline_mode = #tpu.pipeline_mode<synchronous>, transform_indices = @transform_2, window_bounds = array<i64: 1, 512>}, {pipeline_mode = #tpu.pipeline_mode<synchronous>, transform_indices = @transform_3, window_bounds = array<i64: 512, 512>}, {pipeline_mode = #tpu.pipeline_mode<synchronous>, transform_indices = @transform_4, window_bounds = array<i64: 1, 512>}, {pipeline_mode = #tpu.pipeline_mode<synchronous>, transform_indices = @transform_5, window_bounds = array<i64: 512, 256>}, {pipeline_mode = #tpu.pipeline_mode<synchronous>, transform_indices = @transform_6, window_bounds = array<i64: 1, 256>}, {pipeline_mode = #tpu.pipeline_mode<synchronous>, transform_indices = @transform_7, window_bounds = array<i64: 1, 256>}, {pipeline_mode = #tpu.pipeline_mode<synchronous>, transform_indices = @transform_8, window_bounds = array<i64: 1, 1>}, {transform_indices = @transform_9, window_bounds = array<i64: 1, 16>}]} {
    %c0 = arith.constant 0 : index
    %c0_0 = arith.constant 0 : index
    %0 = vector.load %arg1[%c0, %c0_0] : memref<16x16xf32, #tpu.memory_space<vmem>>, vector<16x16xf32>
    %1 = arith.truncf %0 : vector<16x16xf32> to vector<16x16xbf16>
    %c0_1 = arith.constant 0 : index
    %c0_2 = arith.constant 0 : index
    %2 = vector.load %arg2[%c0_1, %c0_2] : memref<16x512xbf16, #tpu.memory_space<vmem>>, vector<16x512xbf16>
    %cst = arith.constant dense<0.000000e+00> : vector<16x512xf32>
    %3 = tpu.matmul %1, %2, %cst {dimension_numbers = #tpu.dot_dimension_numbers<[1], [0], [0], [1], [0, 0, 1, 1], [], []>} : vector<16x16xbf16>, vector<16x512xbf16>, vector<16x512xf32> -> vector<16x512xf32>
    %c0_3 = arith.constant 0 : index
    %c0_4 = arith.constant 0 : index
    %4 = vector.load %arg3[%c0_3, %c0_4] : memref<1x512xf32, #tpu.memory_space<vmem>>, vector<1x512xf32>
    %5 = vector.broadcast %4 : vector<1x512xf32> to vector<16x512xf32>
    %6 = arith.addf %3, %5 : vector<16x512xf32>
    %cst_5 = arith.constant 0.000000e+00 : f32
    %7 = vector.broadcast %cst_5 : f32 to vector<16x512xf32>
    %8 = arith.maximumf %6, %7 : vector<16x512xf32>
    %9 = arith.truncf %8 : vector<16x512xf32> to vector<16x512xbf16>
    %c0_6 = arith.constant 0 : index
    %c0_7 = arith.constant 0 : index
    %10 = vector.load %arg4[%c0_6, %c0_7] : memref<512x512xbf16, #tpu.memory_space<vmem>>, vector<512x512xbf16>
    %cst_8 = arith.constant dense<0.000000e+00> : vector<16x512xf32>
    %11 = tpu.matmul %9, %10, %cst_8 {dimension_numbers = #tpu.dot_dimension_numbers<[1], [0], [0], [1], [0, 0, 1, 1], [], []>} : vector<16x512xbf16>, vector<512x512xbf16>, vector<16x512xf32> -> vector<16x512xf32>
    %c0_9 = arith.constant 0 : index
    %c0_10 = arith.constant 0 : index
    %12 = vector.load %arg5[%c0_9, %c0_10] : memref<1x512xf32, #tpu.memory_space<vmem>>, vector<1x512xf32>
    %13 = vector.broadcast %12 : vector<1x512xf32> to vector<16x512xf32>
    %14 = arith.addf %11, %13 : vector<16x512xf32>
    %cst_11 = arith.constant 0.000000e+00 : f32
    %15 = vector.broadcast %cst_11 : f32 to vector<16x512xf32>
    %16 = arith.maximumf %14, %15 : vector<16x512xf32>
    %17 = arith.truncf %16 : vector<16x512xf32> to vector<16x512xbf16>
    %c0_12 = arith.constant 0 : index
    %c0_13 = arith.constant 0 : index
    %18 = vector.load %arg6[%c0_12, %c0_13] : memref<512x256xbf16, #tpu.memory_space<vmem>>, vector<512x256xbf16>
    %cst_14 = arith.constant dense<0.000000e+00> : vector<16x256xf32>
    %19 = tpu.matmul %17, %18, %cst_14 {dimension_numbers = #tpu.dot_dimension_numbers<[1], [0], [0], [1], [0, 0, 1, 1], [], []>} : vector<16x512xbf16>, vector<512x256xbf16>, vector<16x256xf32> -> vector<16x256xf32>
    %c0_15 = arith.constant 0 : index
    %c0_16 = arith.constant 0 : index
    %20 = vector.load %arg7[%c0_15, %c0_16] : memref<1x256xf32, #tpu.memory_space<vmem>>, vector<1x256xf32>
    %21 = vector.broadcast %20 : vector<1x256xf32> to vector<16x256xf32>
    %22 = arith.addf %19, %21 : vector<16x256xf32>
    %cst_17 = arith.constant 0.000000e+00 : f32
    %23 = vector.broadcast %cst_17 : f32 to vector<16x256xf32>
    %24 = arith.maximumf %22, %23 : vector<16x256xf32>
    %c0_18 = arith.constant 0 : index
    %c0_19 = arith.constant 0 : index
    %25 = vector.load %arg8[%c0_18, %c0_19] : memref<1x256xbf16, #tpu.memory_space<vmem>>, vector<1x256xbf16>
    %26 = arith.extf %25 : vector<1x256xbf16> to vector<1x256xf32>
    %27 = vector.broadcast %26 : vector<1x256xf32> to vector<16x256xf32>
    %28 = arith.mulf %24, %27 : vector<16x256xf32>
    %cst_20 = arith.constant dense<0.000000e+00> : vector<16xf32>
    %29 = vector.multi_reduction <add>, %28, %cst_20 [1] : vector<16x256xf32> to vector<16xf32>
    %30 = vector.shape_cast %29 : vector<16xf32> to vector<1x16xf32>
    %c0_21 = arith.constant 0 : index
    %c0_22 = arith.constant 0 : index
    %31 = vector.load %arg9[%c0_21, %c0_22] : memref<1x1xf32, #tpu.memory_space<vmem>>, vector<1x1xf32>
    %32 = vector.broadcast %31 : vector<1x1xf32> to vector<1x16xf32>
    %33 = arith.addf %30, %32 : vector<1x16xf32>
    %c0_23 = arith.constant 0 : index
    %c0_24 = arith.constant 0 : index
    %34 = vector.load %arg10[%c0_23, %c0_24] : memref<1x16xf32, #tpu.memory_space<vmem>>, vector<1x16xf32>
    tpu.vector_store %arg10[%c0_23, %c0_24], %33 {strides = array<i32>} : memref<1x16xf32, #tpu.memory_space<vmem>>, vector<1x16xf32>,
    return
  }
  func.func @transform_0(%arg0: i32) -> (i32, i32) {
    %c0_i32 = arith.constant 0 : i32
    %c0_i32_0 = arith.constant 0 : i32
    return %arg0, %c0_i32 : i32, i32
  }
  func.func @transform_1(%arg0: i32) -> (i32, i32) {
    %c0_i32 = arith.constant 0 : i32
    %c0_i32_0 = arith.constant 0 : i32
    %c0_i32_1 = arith.constant 0 : i32
    return %c0_i32, %c0_i32_0 : i32, i32
  }
  func.func @transform_2(%arg0: i32) -> (i32, i32) {
    %c0_i32 = arith.constant 0 : i32
    %c0_i32_0 = arith.constant 0 : i32
    %c0_i32_1 = arith.constant 0 : i32
    return %c0_i32, %c0_i32_0 : i32, i32
  }
  func.func @transform_3(%arg0: i32) -> (i32, i32) {
    %c0_i32 = arith.constant 0 : i32
    %c0_i32_0 = arith.constant 0 : i32
    %c0_i32_1 = arith.constant 0 : i32
    return %c0_i32, %c0_i32_0 : i32, i32
  }
  func.func @transform_4(%arg0: i32) -> (i32, i32) {
    %c0_i32 = arith.constant 0 : i32
    %c0_i32_0 = arith.constant 0 : i32
    %c0_i32_1 = arith.constant 0 : i32
    return %c0_i32, %c0_i32_0 : i32, i32
  }
  func.func @transform_5(%arg0: i32) -> (i32, i32) {
    %c0_i32 = arith.constant 0 : i32
    %c0_i32_0 = arith.constant 0 : i32
    %c0_i32_1 = arith.constant 0 : i32
    return %c0_i32, %c0_i32_0 : i32, i32
  }
  func.func @transform_6(%arg0: i32) -> (i32, i32) {
    %c0_i32 = arith.constant 0 : i32
    %c0_i32_0 = arith.constant 0 : i32
    %c0_i32_1 = arith.constant 0 : i32
    return %c0_i32, %c0_i32_0 : i32, i32
  }
  func.func @transform_7(%arg0: i32) -> (i32, i32) {
    %c0_i32 = arith.constant 0 : i32
    %c0_i32_0 = arith.constant 0 : i32
    %c0_i32_1 = arith.constant 0 : i32
    return %c0_i32, %c0_i32_0 : i32, i32
  }
  func.func @transform_8(%arg0: i32) -> (i32, i32) {
    %c0_i32 = arith.constant 0 : i32
    %c0_i32_0 = arith.constant 0 : i32
    %c0_i32_1 = arith.constant 0 : i32
    return %c0_i32, %c0_i32_0 : i32, i32
  }
  func.func @transform_9(%arg0: i32) -> (i32, i32) {
    %c0_i32 = arith.constant 0 : i32
    %c0_i32_0 = arith.constant 0 : i32
    return %arg0, %c0_i32 : i32, i32
  }
}

</mosaic_0001>

<bundles_post_ra>
// kernel: tpu_custom_call.1
= control target key start
LH: loop header
LB: loop body
LE: loop exit
PB: predicated region body
PF: predicated region fallthrough
CT: control target
= control target key end

     0   :  { %s2529_s0 = inlined_call_operand.hbm [shape: f32[16,16], index: 0, kind: input, shape index: {}]   ;;  %s2530_s1 = inlined_call_operand.hbm [shape: bf16[16,512], index: 1, kind: input, shape index: {}]   ;;  %s2531_s2 = inlined_call_operand.vmem [shape: f32[1,512], index: 2, kind: input, shape index: {}]   ;;  %s2532_s3 = inlined_call_operand.hbm [shape: bf16[512,512], index: 3, kind: input, shape index: {}]   ;;  %s2533_s4 = inlined_call_operand.vmem [shape: f32[1,512], index: 4, kind: input, shape index: {}]   ;;  %s2534_s5 = inlined_call_operand.hbm [shape: bf16[512,256], index: 5, kind: input, shape index: {}]   ;;  %s2535_s6 = inlined_call_operand.vmem [shape: f32[1,256], index: 6, kind: input, shape index: {}]   ;;  %s2536_s7 = inlined_call_operand.vmem [shape: bf16[1,256], index: 7, kind: input, shape index: {}]   ;;  %s2537_s8 = inlined_call_operand.<no memory space> [shape: f32[1,1], index: 8, kind: input, shape index: {}]   ;;  %s2538_s9 = inlined_call_operand.hbm [shape: f32[1,16], index: 9, kind: output, shape index: {}]  }
   0x1   :  { %v14_v0 = vstv %s2537_s8 }
   0x2   :  { %15 = vst [vmem:[#allocation2] sm:$0x1] %v14_v0 }
   0x3   :  { %16 = vsyncpa [#allocation4], 0 }
   0x4   :  { %17 = vsyncpa [#allocation7], 0 }
   0x5   :  { %18 = vsyncpa [#allocation10], 0 }
   0x6   :  { %19 = vsyncpa [#allocation5], 0  ;;  %s2392_s11 = smov [#allocation6]  }
   0x7   :  { %s37_s12 = sshll.u32 %s2392_s11, 4  ;;  %s38_s12 = int_to_ptr.vmem [resolvable:$true] %s37_s12 }
   0x8   :  { %s2292_s13 = scalar_lea.vmem %s38_s12, 512  ;;  %p2297_p1 = scmp.lt.s32.totalorder %s38_s12, %s38_s12 }
   0x9   :  { %p2293_p0 = scmp.ne.s32.totalorder %s38_s12, %s2292_s13  ;;  %p2298_p2 = scmp.lt.s32.totalorder %s2292_s13, %s2292_s13 }
   0xb   :  { %p2299_p3 = por %p2298_p2, %p2297_p1 }
   0xd   :  { %p2300_p4 = pnand %p2299_p3, %p2293_p0 }
   0xf   :  { %2303 = shalt.err (!%p2300_p4)
}
  0x10   :  { %s2393_s14 = smov 256   ;;  %s2394_s15 = smov 16  }
  0x11   :  { %43 = dma.hbm_to_vmem [thread:$0]  %s2530_s1, 512, %s38_s12, [#allocation7], %s2393_s14, %s2393_s14, %s2394_s15  }
  0x12   :  { %s2395_s17 = smov [#allocation3]  }
  0x13   :  { %s25_s18 = sshll.u32 %s2395_s17, 4  ;;  %s26_s18 = int_to_ptr.vmem [resolvable:$true] %s25_s18 }
  0x14   :  { %s2312_s19 = scalar_lea.vmem %s26_s18, 256  ;;  %p2317_p6 = scmp.lt.s32.totalorder %s26_s18, %s26_s18 }
  0x15   :  { %p2313_p5 = scmp.ne.s32.totalorder %s26_s18, %s2312_s19  ;;  %p2318_p7 = scmp.lt.s32.totalorder %s2312_s19, %s2312_s19 }
  0x17   :  { %p2319_p8 = por %p2318_p7, %p2317_p6 }
  0x19   :  { %p2320_p9 = pnand %p2319_p8, %p2313_p5 }
  0x1b   :  { %2323 = shalt.err (!%p2320_p9)
}
  0x1c   :  { %s2396_s20 = smov 128   ;;  %s2397_s21 = smov 8  }
  0x1d   :  { %31 = dma.hbm_to_vmem [thread:$0]  %s2529_s0, 256, %s26_s18, [#allocation4], %s2396_s20, %s2396_s20, %s2397_s21  }
  0x1e   :  { %s2398_s24 = smov [#allocation8]   ;;  %s2399_s26 = smov [#allocation9]  }
  0x1f   :  { %s51_s25 = sshll.u32 %s2398_s24, 4  ;;  %s65_s1 = sshll.u32 %s2399_s26, 4  ;;  %s52_s25 = int_to_ptr.vmem [resolvable:$true] %s51_s25  ;;  %s66_s1 = int_to_ptr.vmem [resolvable:$true] %s65_s1 }
  0x20   :  { %s2332_s27 = scalar_lea.vmem %s52_s25, 16384  ;;  %p2337_p11 = scmp.lt.s32.totalorder %s52_s25, %s52_s25 }
  0x21   :  { %p2333_p10 = scmp.ne.s32.totalorder %s52_s25, %s2332_s27  ;;  %p2338_p12 = scmp.lt.s32.totalorder %s2332_s27, %s2332_s27 }
  0x23   :  { %p2339_p13 = por %p2338_p12, %p2337_p11 }
  0x25   :  { %p2340_p0 = pnand %p2339_p13, %p2333_p10 }
  0x27   :  { %2343 = shalt.err (!%p2340_p0)
}
  0x28   :  { %57 = dma.hbm_to_vmem [thread:$0]  %s2532_s3, 16384, %s52_s25, [#allocation7], %s2393_s14, %s2393_s14, %s2394_s15  }
  0x29   :  { %s2352_s0 = scalar_lea.vmem %s66_s1, 8192  ;;  %p2357_p2 = scmp.lt.s32.totalorder %s66_s1, %s66_s1 }
  0x2a   :  { %p2353_p1 = scmp.ne.s32.totalorder %s66_s1, %s2352_s0  ;;  %p2358_p3 = scmp.lt.s32.totalorder %s2352_s0, %s2352_s0 }
  0x2c   :  { %p2359_p4 = por %p2358_p3, %p2357_p2 }
  0x2e   :  { %p2360_p5 = pnand %p2359_p4, %p2353_p1 }
  0x30   :  { %2363 = shalt.err (!%p2360_p5)
}
  0x31   :  { %71 = dma.hbm_to_vmem [thread:$0]  %s2534_s5, 8192, %s66_s1, [#allocation10], %s2396_s20, %s2396_s20, %s2397_s21  }
  0x32   :  { %2384 = dma.done.wait [#allocation4], 256  }
  0x33   :  { %2385 = vsyncadd [#allocation4], 4294967040 }
  0x34   :  { %2386 = dma.done.wait [#allocation7], 16896  }
  0x35   :  { %2387 = vsyncadd [#allocation7], 4294950400 }
  0x36   :  { %2388 = dma.done.wait [#allocation10], 8192  }
  0x37   :  { %2389 = vsyncadd [#allocation10], 4294959104  ;;  %v2400_v1 = vmov 0   ;;  %v1990_v2 = vld [vmem:[#allocation6 + $0x4] ss:$16 sps:$4 sm:$0xff]   ;;  %v92_v7 = vld [vmem:[#allocation3 + $0x8] sm:$0xff] }
  0x38   :  { %176 = vmatprep.mubr.bf16.mxu0 %v2400_v1  ;;  %219 = vmatprep.mubr.bf16.mxu1 %v2400_v1  ;;  %v1992_v3 = vld [vmem:[#allocation6 + $0xc] ss:$16 sps:$4 sm:$0xff]   ;;  %v1994_v4 = vld [vmem:[#allocation6] ss:$16 sps:$4 sm:$0xff]   ;;  %v1995_v5 = vld [vmem:[#allocation6 + $0x8] ss:$16 sps:$4 sm:$0xff]  }
  0x39   :  { %1988 = vset.pattern.permute.xlu1 %v2400_v1  ;;  %1989 = vset.pattern.permute.xlu0 %v2400_v1  ;;  %v91_v6 = vld [vmem:[#allocation3] sm:$0xff]  ;;  %vm140_vm0 = vcmask 130048   ;;  %vm1758_vm1 = vcmask 130112   ;;  %vm1761_vm2 = vcmask 122880  }
  0x3a   :  { %158 = vmatprep.subr.bf16.mxu0 %v1990_v2  ;;  %201 = vmatprep.subr.bf16.mxu1 %v1992_v3  ;;  %v93_v8 = vpack.c.bf16 %v92_v7, %v91_v6  ;;  %v1996_v9 = vld [vmem:[#allocation8 + $0xe0] ss:$16 sps:$4 sm:$0xff]   ;;  %v1998_v10 = vld [vmem:[#allocation8 + $0xe4] ss:$16 sps:$4 sm:$0xff]  }
  0x3b   :  { %159 = vmatpush1.bf16.msra.mxu0 %v1994_v4  ;;  %202 = vmatpush1.bf16.msra.mxu1 %v1995_v5  ;;  %v1999_v11 = vld [vmem:[#allocation8 + $0x2e0] ss:$16 sps:$4 sm:$0xff]   ;;  %v2001_v12 = vld [vmem:[#allocation8 + $0x2e4] ss:$16 sps:$4 sm:$0xff]  }
  0x3c   :  { %1032 = vmatprep.subr.bf16.mxu0 %v1998_v10  ;;  %v2004_v13 = vld [vmem:[#allocation8 + $0xc4] ss:$16 sps:$4 sm:$0xff]   ;;  %1075 = vmatprep.subr.bf16.mxu1 %v2001_v12  ;;  %v2002_v14 = vld [vmem:[#allocation8 + $0xc0] ss:$16 sps:$4 sm:$0xff]   ;;  %v2097_v10 = vld [vmem:[#allocation8 + $0x2ec] ss:$16 sps:$4 sm:$0xff]  }
  0x3d   :  { %v2007_v15 = vld [vmem:[#allocation8 + $0x2c4] ss:$16 sps:$4 sm:$0xff]   ;;  %v2005_v16 = vld [vmem:[#allocation8 + $0x2c0] ss:$16 sps:$4 sm:$0xff]  }
  0x3e   :  { %1784 = vmatmul.mubr.msk.bf16.vlgmr.msra.gmra.mxu0 %vm140_vm0, %v93_v8  ;;  %1785 = vmatmul.mubr.msk.bf16.vlgmr.msra.gmra.mxu1 %vm140_vm0, %v93_v8  ;;  %v2010_v17 = vld [vmem:[#allocation8 + $0xa4] ss:$16 sps:$4 sm:$0xff]   ;;  %v2008_v19 = vld [vmem:[#allocation8 + $0xa0] ss:$16 sps:$4 sm:$0xff]  }
  0x3f   :  { %1033 = vmatpush1.bf16.msra.mxu0 %v1996_v9  ;;  %1076 = vmatpush1.bf16.msra.mxu1 %v1999_v11  ;;  %v2013_v18 = vld [vmem:[#allocation8 + $0x2a4] ss:$16 sps:$4 sm:$0xff]   ;;  %v2011_v20 = vld [vmem:[#allocation8 + $0x2a0] ss:$16 sps:$4 sm:$0xff]   ;;  %v2094_v9 = vld [vmem:[#allocation8 + $0xec] ss:$16 sps:$4 sm:$0xff]   ;;  %v100_v11 = vlaneseq }
  0x40   :  { %1034 = vmatprep.subr.bf16.mxu0 %v2004_v13  ;;  %1077 = vmatprep.subr.bf16.mxu1 %v2007_v15  ;;  %v2016_v21 = vld [vmem:[#allocation8 + $0x84] ss:$16 sps:$4 sm:$0xff]   ;;  %v2014_v23 = vld [vmem:[#allocation8 + $0x80] ss:$16 sps:$4 sm:$0xff]  }
  0x41   :  { %v2019_v22 = vld [vmem:[#allocation8 + $0x284] ss:$16 sps:$4 sm:$0xff]   ;;  %v2017_v24 = vld [vmem:[#allocation8 + $0x280] ss:$16 sps:$4 sm:$0xff]   ;;  %v2474_v12 = vshrl.u32 %v100_v11, 7 }
  0x42   :  { %v2022_v25 = vld [vmem:[#allocation8 + $0x64] ss:$16 sps:$4 sm:$0xff]   ;;  %v2020_v27 = vld [vmem:[#allocation8 + $0x60] ss:$16 sps:$4 sm:$0xff]  }
  0x43   :  { %1035 = vmatpush1.bf16.msra.mxu0 %v2002_v14  ;;  %1078 = vmatpush1.bf16.msra.mxu1 %v2005_v16  ;;  %v2025_v26 = vld [vmem:[#allocation8 + $0x264] ss:$16 sps:$4 sm:$0xff]   ;;  %v2023_v28 = vld [vmem:[#allocation8 + $0x260] ss:$16 sps:$4 sm:$0xff]   ;;  %v2477_v13 = vsub.s32 1, %v2474_v12  ;;  %v114_v14 = vsub.s32 3, %v2474_v12 }
  0x44   :  { %1036 = vmatprep.subr.bf16.mxu0 %v2010_v17  ;;  %1079 = vmatprep.subr.bf16.mxu1 %v2013_v18  ;;  %v2028_v29 = vld [vmem:[#allocation8 + $0x44] ss:$16 sps:$4 sm:$0xff]   ;;  %v2026_v31 = vld [vmem:[#allocation8 + $0x40] ss:$16 sps:$4 sm:$0xff]   ;;  %v2481_v15 = vsub.s32 0, %v2474_v12  ;;  %v2484_v16 = vsub.s32 2, %v2474_v12 }
  0x45   :  { %v2031_v30 = vld [vmem:[#allocation8 + $0x244] ss:$16 sps:$4 sm:$0xff]   ;;  %v2029_v32 = vld [vmem:[#allocation8 + $0x240] ss:$16 sps:$4 sm:$0xff]  }
  0x46   :  { %v2034_v33 = vld [vmem:[#allocation8 + $0x24] ss:$16 sps:$4 sm:$0xff]   ;;  %v2032_v35 = vld [vmem:[#allocation8 + $0x20] ss:$16 sps:$4 sm:$0xff]  }
  0x47   :  { %1037 = vmatpush1.bf16.msra.mxu0 %v2008_v19  ;;  %1080 = vmatpush1.bf16.msra.mxu1 %v2011_v20  ;;  %v2037_v34 = vld [vmem:[#allocation8 + $0x224] ss:$16 sps:$4 sm:$0xff]   ;;  %v2035_v36 = vld [vmem:[#allocation8 + $0x220] ss:$16 sps:$4 sm:$0xff]  }
  0x48   :  { %1038 = vmatprep.subr.bf16.mxu0 %v2016_v21  ;;  %1081 = vmatprep.subr.bf16.mxu1 %v2019_v22  ;;  %v2040_v37 = vld [vmem:[#allocation8 + $0x4] ss:$16 sps:$4 sm:$0xff]   ;;  %v2038_v39 = vld [vmem:[#allocation8] ss:$16 sps:$4 sm:$0xff]  }
  0x49   :  { %v2043_v38 = vld [vmem:[#allocation8 + $0x204] ss:$16 sps:$4 sm:$0xff]   ;;  %v2041_v40 = vld [vmem:[#allocation8 + $0x200] ss:$16 sps:$4 sm:$0xff]  }
  0x4a   :  { %v2046_v41 = vld [vmem:[#allocation8 + $0x1e4] ss:$16 sps:$4 sm:$0xff]   ;;  %v2044_v43 = vld [vmem:[#allocation8 + $0x1e0] ss:$16 sps:$4 sm:$0xff]  }
  0x4b   :  { %1039 = vmatpush1.bf16.msra.mxu0 %v2014_v23  ;;  %1082 = vmatpush1.bf16.msra.mxu1 %v2017_v24  ;;  %v2049_v42 = vld [vmem:[#allocation8 + $0x3e4] ss:$16 sps:$4 sm:$0xff]   ;;  %v2047_v44 = vld [vmem:[#allocation8 + $0x3e0] ss:$16 sps:$4 sm:$0xff]  }
  0x4c   :  { %1040 = vmatprep.subr.bf16.mxu0 %v2022_v25  ;;  %1083 = vmatprep.subr.bf16.mxu1 %v2025_v26  ;;  %v2052_v45 = vld [vmem:[#allocation8 + $0x1c4] ss:$16 sps:$4 sm:$0xff]   ;;  %v2050_v46 = vld [vmem:[#allocation8 + $0x1c0] ss:$16 sps:$4 sm:$0xff]  }
  0x4d   :  { %v2055_v47 = vld [vmem:[#allocation8 + $0x3c4] ss:$16 sps:$4 sm:$0xff]   ;;  %v2053_v48 = vld [vmem:[#allocation8 + $0x3c0] ss:$16 sps:$4 sm:$0xff]  }
  0x4e   :  { %v2058_v49 = vld [vmem:[#allocation8 + $0x1a4] ss:$16 sps:$4 sm:$0xff]   ;;  %v2056_v51 = vld [vmem:[#allocation8 + $0x1a0] ss:$16 sps:$4 sm:$0xff]  }
  0x4f   :  { %1041 = vmatpush1.bf16.msra.mxu0 %v2020_v27  ;;  %1084 = vmatpush1.bf16.msra.mxu1 %v2023_v28  ;;  %v2061_v50 = vld [vmem:[#allocation8 + $0x3a4] ss:$16 sps:$4 sm:$0xff]   ;;  %v2059_v52 = vld [vmem:[#allocation8 + $0x3a0] ss:$16 sps:$4 sm:$0xff]  }
  0x50   :  { %1042 = vmatprep.subr.bf16.mxu0 %v2028_v29  ;;  %1085 = vmatprep.subr.bf16.mxu1 %v2031_v30  ;;  %v2064_v53 = vld [vmem:[#allocation8 + $0x184] ss:$16 sps:$4 sm:$0xff]   ;;  %v2062_v55 = vld [vmem:[#allocation8 + $0x180] ss:$16 sps:$4 sm:$0xff]  }
  0x51   :  { %v2067_v54 = vld [vmem:[#allocation8 + $0x384] ss:$16 sps:$4 sm:$0xff]   ;;  %v2065_v56 = vld [vmem:[#allocation8 + $0x380] ss:$16 sps:$4 sm:$0xff]  }
  0x52   :  { %v2070_v57 = vld [vmem:[#allocation8 + $0x164] ss:$16 sps:$4 sm:$0xff]   ;;  %v2068_v59 = vld [vmem:[#allocation8 + $0x160] ss:$16 sps:$4 sm:$0xff]  }
  0x53   :  { %1043 = vmatpush1.bf16.msra.mxu0 %v2026_v31  ;;  %1086 = vmatpush1.bf16.msra.mxu1 %v2029_v32  ;;  %v2073_v58 = vld [vmem:[#allocation8 + $0x364] ss:$16 sps:$4 sm:$0xff]   ;;  %v2071_v60 = vld [vmem:[#allocation8 + $0x360] ss:$16 sps:$4 sm:$0xff]  }
  0x54   :  { %1044 = vmatprep.subr.bf16.mxu0 %v2034_v33  ;;  %1087 = vmatprep.subr.bf16.mxu1 %v2037_v34  ;;  %v2076_v61 = vld [vmem:[#allocation8 + $0x144] ss:$16 sps:$4 sm:$0xff]   ;;  %v2074_v63 = vld [vmem:[#allocation8 + $0x140] ss:$16 sps:$4 sm:$0xff]  }
  0x55   :  { %v2079_v62 = vld [vmem:[#allocation8 + $0x344] ss:$16 sps:$4 sm:$0xff]   ;;  %v2077_v0 = vld [vmem:[#allocation8 + $0x340] ss:$16 sps:$4 sm:$0xff]  }
  0x56   :  { %v2082_v1 = vld [vmem:[#allocation8 + $0x124] ss:$16 sps:$4 sm:$0xff]   ;;  %v2080_v3 = vld [vmem:[#allocation8 + $0x120] ss:$16 sps:$4 sm:$0xff]  }
  0x57   :  { %1045 = vmatpush1.bf16.msra.mxu0 %v2032_v35  ;;  %1088 = vmatpush1.bf16.msra.mxu1 %v2035_v36  ;;  %v2085_v2 = vld [vmem:[#allocation8 + $0x324] ss:$16 sps:$4 sm:$0xff]   ;;  %v2083_v4 = vld [vmem:[#allocation8 + $0x320] ss:$16 sps:$4 sm:$0xff]  }
  0x58   :  { %1046 = vmatprep.subr.bf16.mxu0 %v2040_v37  ;;  %1089 = vmatprep.subr.bf16.mxu1 %v2043_v38  ;;  %v2088_v5 = vld [vmem:[#allocation8 + $0x104] ss:$16 sps:$4 sm:$0xff]   ;;  %v2086_v7 = vld [vmem:[#allocation8 + $0x100] ss:$16 sps:$4 sm:$0xff]  }
  0x59   :  { %v2091_v6 = vld [vmem:[#allocation8 + $0x304] ss:$16 sps:$4 sm:$0xff]   ;;  %v2089_v8 = vld [vmem:[#allocation8 + $0x300] ss:$16 sps:$4 sm:$0xff]  }
  0x5a   :  { %v98_v17 = vld [vmem:[%s2531_s2] sm:$0xf] }
  0x5b   :  { %1047 = vmatpush1.bf16.msra.mxu0 %v2038_v39  ;;  %1090 = vmatpush1.bf16.msra.mxu1 %v2041_v40  ;;  %v107_v20 = vrot.slane %v98_v17, %v2477_v13  ;;  %v115_v21 = vrot.slane %v98_v17, %v114_v14  ;;  %v103_v22 = vrot.slane %v98_v17, %v2481_v15 }
  0x5c   :  { %1048 = vmatprep.subr.bf16.mxu0 %v2046_v41  ;;  %1091 = vmatprep.subr.bf16.mxu1 %v2049_v42  ;;  %v111_v23 = vrot.slane %v98_v17, %v2484_v16  ;;  %v2131_v17 = vld [vmem:[#allocation8 + $0x228] ss:$16 sps:$4 sm:$0xff]  }
  0x5f   :  { %1049 = vmatpush2.bf16.msra.mxu0 %v2044_v43  ;;  %1092 = vmatpush2.bf16.msra.mxu1 %v2047_v44 }
  0x60   :  { %1050 = vmatprep.subr.bf16.mxu0 %v2052_v45  ;;  %1093 = vmatprep.subr.bf16.mxu1 %v2055_v47 }
  0x63   :  { %1051 = vmatpush2.bf16.msra.mxu0 %v2050_v46  ;;  %1094 = vmatpush2.bf16.msra.mxu1 %v2053_v48  ;;  %v2092_v48 = vld [vmem:[#allocation8 + $0xe8] ss:$16 sps:$4 sm:$0xff]  }
  0x64   :  { %1052 = vmatprep.subr.bf16.mxu0 %v2058_v49  ;;  %1095 = vmatprep.subr.bf16.mxu1 %v2061_v50  ;;  %v2095_v49 = vld [vmem:[#allocation8 + $0x2e8] ss:$16 sps:$4 sm:$0xff]  }
  0x67   :  { %1053 = vmatpush2.bf16.msra.mxu0 %v2056_v51  ;;  %1096 = vmatpush2.bf16.msra.mxu1 %v2059_v52  ;;  %v2100_v52 = vld [vmem:[#allocation8 + $0xcc] ss:$16 sps:$4 sm:$0xff]  }
  0x68   :  { %1054 = vmatprep.subr.bf16.mxu0 %v2064_v53  ;;  %1097 = vmatprep.subr.bf16.mxu1 %v2067_v54  ;;  %v2103_v53 = vld [vmem:[#allocation8 + $0x2cc] ss:$16 sps:$4 sm:$0xff]   ;;  %v2098_v54 = vld [vmem:[#allocation8 + $0xc8] ss:$16 sps:$4 sm:$0xff]  }
  0x6b   :  { %1055 = vmatpush2.bf16.msra.mxu0 %v2062_v55  ;;  %1098 = vmatpush2.bf16.msra.mxu1 %v2065_v56  ;;  %v2101_v55 = vld [vmem:[#allocation8 + $0x2c8] ss:$16 sps:$4 sm:$0xff]   ;;  %v2106_v56 = vld [vmem:[#allocation8 + $0xac] ss:$16 sps:$4 sm:$0xff]  }
  0x6c   :  { %1056 = vmatprep.subr.bf16.mxu0 %v2070_v57  ;;  %1099 = vmatprep.subr.bf16.mxu1 %v2073_v58  ;;  %v2109_v57 = vld [vmem:[#allocation8 + $0x2ac] ss:$16 sps:$4 sm:$0xff]   ;;  %v2104_v58 = vld [vmem:[#allocation8 + $0xa8] ss:$16 sps:$4 sm:$0xff]  }
  0x6f   :  { %1057 = vmatpush2.bf16.msra.mxu0 %v2068_v59  ;;  %1100 = vmatpush2.bf16.msra.mxu1 %v2071_v60  ;;  %v2107_v59 = vld [vmem:[#allocation8 + $0x2a8] ss:$16 sps:$4 sm:$0xff]   ;;  %v2112_v60 = vld [vmem:[#allocation8 + $0x8c] ss:$16 sps:$4 sm:$0xff]  }
  0x70   :  { %1058 = vmatprep.subr.bf16.mxu0 %v2076_v61  ;;  %1101 = vmatprep.subr.bf16.mxu1 %v2079_v62  ;;  %v2115_v61 = vld [vmem:[#allocation8 + $0x28c] ss:$16 sps:$4 sm:$0xff]   ;;  %v2110_v62 = vld [vmem:[#allocation8 + $0x88] ss:$16 sps:$4 sm:$0xff]  }
  0x73   :  { %1059 = vmatpush2.bf16.msra.mxu0 %v2074_v63  ;;  %1102 = vmatpush2.bf16.msra.mxu1 %v2077_v0  ;;  %v2113_v63 = vld [vmem:[#allocation8 + $0x288] ss:$16 sps:$4 sm:$0xff]   ;;  %v2118_v0 = vld [vmem:[#allocation8 + $0x6c] ss:$16 sps:$4 sm:$0xff]  }
  0x74   :  { %1060 = vmatprep.subr.bf16.mxu0 %v2082_v1  ;;  %1103 = vmatprep.subr.bf16.mxu1 %v2085_v2  ;;  %v2121_v1 = vld [vmem:[#allocation8 + $0x26c] ss:$16 sps:$4 sm:$0xff]   ;;  %v2116_v2 = vld [vmem:[#allocation8 + $0x68] ss:$16 sps:$4 sm:$0xff]  }
  0x77   :  { %1061 = vmatpush2.bf16.msra.mxu0 %v2080_v3  ;;  %1104 = vmatpush2.bf16.msra.mxu1 %v2083_v4  ;;  %v2119_v3 = vld [vmem:[#allocation8 + $0x268] ss:$16 sps:$4 sm:$0xff]   ;;  %v2124_v4 = vld [vmem:[#allocation8 + $0x4c] ss:$16 sps:$4 sm:$0xff]  }
  0x78   :  { %1062 = vmatprep.subr.bf16.mxu0 %v2088_v5  ;;  %1105 = vmatprep.subr.bf16.mxu1 %v2091_v6  ;;  %v2127_v5 = vld [vmem:[#allocation8 + $0x24c] ss:$16 sps:$4 sm:$0xff]   ;;  %v2122_v6 = vld [vmem:[#allocation8 + $0x48] ss:$16 sps:$4 sm:$0xff]  }
  0x7b   :  { %1063 = vmatpush2.bf16.msra.mxu0 %v2086_v7  ;;  %1106 = vmatpush2.bf16.msra.mxu1 %v2089_v8  ;;  %v2125_v7 = vld [vmem:[#allocation8 + $0x248] ss:$16 sps:$4 sm:$0xff]   ;;  %v2130_v8 = vld [vmem:[#allocation8 + $0x2c] ss:$16 sps:$4 sm:$0xff]  }
  0x7c   :  { %1118 = vmatprep.subr.bf16.mxu0 %v2094_v9  ;;  %1161 = vmatprep.subr.bf16.mxu1 %v2097_v10  ;;  %v2133_v9 = vld [vmem:[#allocation8 + $0x22c] ss:$16 sps:$4 sm:$0xff]   ;;  %v2128_v10 = vld [vmem:[#allocation8 + $0x28] ss:$16 sps:$4 sm:$0xff]  }
  0xfe   :  { %v178_v18 = vpop.f32.mrf.mxu0  ;;  %v221_v19 = vpop.f32.mrf.mxu1 }
  0xff   :  { %v179_v32 = vadd.f32 %v178_v18, %v103_v22  ;;  %v222_v33 = vadd.f32 %v221_v19, %v111_v23  ;;  %v2136_v18 = vld [vmem:[#allocation8 + $0xc] ss:$16 sps:$4 sm:$0xff]  }
 0x100   :  { %v180_v24 = vpop.f32.mrf.mxu0  ;;  %v223_v25 = vpop.f32.mrf.mxu1  ;;  %v2139_v19 = vld [vmem:[#allocation8 + $0x20c] ss:$16 sps:$4 sm:$0xff]  }
 0x101   :  { %v181_v28 = vadd.f32 %v180_v24, %v107_v20  ;;  %v224_v29 = vadd.f32 %v223_v25, %v115_v21  ;;  %v230_v44 = vmax.f32 %v179_v32, 0.0  ;;  %v232_v45 = vmax.f32 %v222_v33, 0.0  ;;  %v2140_v24 = vld [vmem:[#allocation8 + $0x1e8] ss:$16 sps:$4 sm:$0xff]  }
 0x102   :  { %v182_v26 = vpop.f32.mrf.mxu0  ;;  %v225_v27 = vpop.f32.mrf.mxu1  ;;  %v2143_v25 = vld [vmem:[#allocation8 + $0x3e8] ss:$16 sps:$4 sm:$0xff]  }
 0x103   :  { %v183_v30 = vadd.f32 %v182_v26, %v103_v22  ;;  %v226_v31 = vadd.f32 %v225_v27, %v111_v23  ;;  %v231_v40 = vmax.f32 %v181_v28, 0.0  ;;  %v233_v41 = vmax.f32 %v224_v29, 0.0  ;;  %v2142_v22 = vld [vmem:[#allocation8 + $0x1ec] ss:$16 sps:$4 sm:$0xff]   ;;  %v2146_v28 = vld [vmem:[#allocation8 + $0x1c8] ss:$16 sps:$4 sm:$0xff]  }
 0x104   :  { %v184_v34 = vpop.f32.mrf.mxu0  ;;  %v227_v35 = vpop.f32.mrf.mxu1  ;;  %v2145_v23 = vld [vmem:[#allocation8 + $0x3ec] ss:$16 sps:$4 sm:$0xff]   ;;  %v2149_v29 = vld [vmem:[#allocation8 + $0x3c8] ss:$16 sps:$4 sm:$0xff]  }
 0x105   :  { %v185_v36 = vadd.f32 %v184_v34, %v107_v20  ;;  %v228_v37 = vadd.f32 %v227_v35, %v115_v21  ;;  %v234_v38 = vmax.f32 %v183_v30, 0.0  ;;  %v236_v39 = vmax.f32 %v226_v31, 0.0  ;;  %v2134_v20 = vld [vmem:[#allocation8 + $0x8] ss:$16 sps:$4 sm:$0xff]   ;;  %v2148_v26 = vld [vmem:[#allocation8 + $0x1cc] ss:$16 sps:$4 sm:$0xff]  }
 0x106   :  { %v2137_v21 = vld [vmem:[#allocation8 + $0x208] ss:$16 sps:$4 sm:$0xff]   ;;  %v2151_v27 = vld [vmem:[#allocation8 + $0x3cc] ss:$16 sps:$4 sm:$0xff]  }
 0x107   :  { %v235_v42 = vmax.f32 %v185_v36, 0.0  ;;  %v237_v43 = vmax.f32 %v228_v37, 0.0  ;;  %v2494_v50 = vpack.c.bf16 %v234_v38, %v230_v44  ;;  %v2496_v51 = vpack.c.bf16 %v236_v39, %v232_v45  ;;  %v2154_v30 = vld [vmem:[#allocation8 + $0x1ac] ss:$16 sps:$4 sm:$0xff]   ;;  %v2152_v32 = vld [vmem:[#allocation8 + $0x1a8] ss:$16 sps:$4 sm:$0xff]  }
 0x108   :  { %v2157_v31 = vld [vmem:[#allocation8 + $0x3ac] ss:$16 sps:$4 sm:$0xff]   ;;  %v2155_v33 = vld [vmem:[#allocation8 + $0x3a8] ss:$16 sps:$4 sm:$0xff]  }
 0x109   :  { %v239_v46 = vpack.c.bf16 %v235_v42, %v231_v40  ;;  %v241_v47 = vpack.c.bf16 %v237_v43, %v233_v41  ;;  %v2160_v34 = vld [vmem:[#allocation8 + $0x18c] ss:$16 sps:$4 sm:$0xff]   ;;  %v2158_v36 = vld [vmem:[#allocation8 + $0x188] ss:$16 sps:$4 sm:$0xff]  }
 0x10a   :  { %v2163_v35 = vld [vmem:[#allocation8 + $0x38c] ss:$16 sps:$4 sm:$0xff]   ;;  %v2161_v37 = vld [vmem:[#allocation8 + $0x388] ss:$16 sps:$4 sm:$0xff]  }
 0x10b   :  { %1064 = vmatprep.mubr.bf16.mxu0 %v239_v46  ;;  %1107 = vmatprep.mubr.bf16.mxu1 %v241_v47  ;;  %v2166_v38 = vld [vmem:[#allocation8 + $0x16c] ss:$16 sps:$4 sm:$0xff]   ;;  %v2164_v40 = vld [vmem:[#allocation8 + $0x168] ss:$16 sps:$4 sm:$0xff]  }
 0x10c   :  { %1065 = vmatmul.mubr.bf16.vlgmr.msra.gmra.mxu0 %v2494_v50  ;;  %1108 = vmatmul.mubr.bf16.vlgmr.msra.gmra.mxu1 %v2496_v51  ;;  %v2169_v39 = vld [vmem:[#allocation8 + $0x36c] ss:$16 sps:$4 sm:$0xff]   ;;  %v2167_v41 = vld [vmem:[#allocation8 + $0x368] ss:$16 sps:$4 sm:$0xff]  }
 0x10d   :  { %1119 = vmatpush1.bf16.msra.mxu0 %v2092_v48  ;;  %1162 = vmatpush1.bf16.msra.mxu1 %v2095_v49  ;;  %v2172_v42 = vld [vmem:[#allocation8 + $0x14c] ss:$16 sps:$4 sm:$0xff]   ;;  %v2170_v44 = vld [vmem:[#allocation8 + $0x148] ss:$16 sps:$4 sm:$0xff]  }
 0x10e   :  { %1150 = vmatprep.mubr.bf16.mxu0 %v239_v46  ;;  %1193 = vmatprep.mubr.bf16.mxu1 %v241_v47  ;;  %v2175_v43 = vld [vmem:[#allocation8 + $0x34c] ss:$16 sps:$4 sm:$0xff]   ;;  %v2173_v45 = vld [vmem:[#allocation8 + $0x348] ss:$16 sps:$4 sm:$0xff]  }
 0x10f   :  { %1120 = vmatprep.subr.bf16.mxu0 %v2100_v52  ;;  %1163 = vmatprep.subr.bf16.mxu1 %v2103_v53  ;;  %v2178_v46 = vld [vmem:[#allocation8 + $0x12c] ss:$16 sps:$4 sm:$0xff]   ;;  %v2176_v48 = vld [vmem:[#allocation8 + $0x128] ss:$16 sps:$4 sm:$0xff]  }
 0x110   :  { %v2181_v47 = vld [vmem:[#allocation8 + $0x32c] ss:$16 sps:$4 sm:$0xff]   ;;  %v2179_v49 = vld [vmem:[#allocation8 + $0x328] ss:$16 sps:$4 sm:$0xff]  }
 0x111   :  { %1121 = vmatpush1.bf16.msra.mxu0 %v2098_v54  ;;  %1164 = vmatpush1.bf16.msra.mxu1 %v2101_v55  ;;  %v2184_v52 = vld [vmem:[#allocation8 + $0x10c] ss:$16 sps:$4 sm:$0xff]   ;;  %v2182_v54 = vld [vmem:[#allocation8 + $0x108] ss:$16 sps:$4 sm:$0xff]  }
 0x112   :  { %1122 = vmatprep.subr.bf16.mxu0 %v2106_v56  ;;  %1165 = vmatprep.subr.bf16.mxu1 %v2109_v57  ;;  %v2187_v53 = vld [vmem:[#allocation8 + $0x30c] ss:$16 sps:$4 sm:$0xff]   ;;  %v2185_v55 = vld [vmem:[#allocation8 + $0x308] ss:$16 sps:$4 sm:$0xff]  }
 0x113   :  { %v2190_v56 = vld [vmem:[#allocation9 + $0x74] ss:$8 sps:$4 sm:$0xff]   ;;  %v2188_v57 = vld [vmem:[#allocation9 + $0x70] ss:$8 sps:$4 sm:$0xff]  }
 0x115   :  { %1123 = vmatpush1.bf16.msra.mxu0 %v2104_v58  ;;  %1166 = vmatpush1.bf16.msra.mxu1 %v2107_v59  ;;  %v2193_v58 = vld [vmem:[#allocation9 + $0x64] ss:$8 sps:$4 sm:$0xff]   ;;  %v2191_v59 = vld [vmem:[#allocation9 + $0x60] ss:$8 sps:$4 sm:$0xff]  }
 0x116   :  { %1124 = vmatprep.subr.bf16.mxu0 %v2112_v60  ;;  %1167 = vmatprep.subr.bf16.mxu1 %v2115_v61  ;;  %v2196_v60 = vld [vmem:[#allocation9 + $0x54] ss:$8 sps:$4 sm:$0xff]   ;;  %v2194_v61 = vld [vmem:[#allocation9 + $0x50] ss:$8 sps:$4 sm:$0xff]  }
 0x119   :  { %1125 = vmatpush1.bf16.msra.mxu0 %v2110_v62  ;;  %1168 = vmatpush1.bf16.msra.mxu1 %v2113_v63  ;;  %v2199_v62 = vld [vmem:[#allocation9 + $0x44] ss:$8 sps:$4 sm:$0xff]   ;;  %v2197_v63 = vld [vmem:[#allocation9 + $0x40] ss:$8 sps:$4 sm:$0xff]  }
 0x11a   :  { %1126 = vmatprep.subr.bf16.mxu0 %v2118_v0  ;;  %1169 = vmatprep.subr.bf16.mxu1 %v2121_v1  ;;  %v2202_v0 = vld [vmem:[#allocation9 + $0x34] ss:$8 sps:$4 sm:$0xff]   ;;  %v2200_v1 = vld [vmem:[#allocation9 + $0x30] ss:$8 sps:$4 sm:$0xff]  }
 0x11d   :  { %1127 = vmatpush1.bf16.msra.mxu0 %v2116_v2  ;;  %1170 = vmatpush1.bf16.msra.mxu1 %v2119_v3  ;;  %v2205_v2 = vld [vmem:[#allocation9 + $0x24] ss:$8 sps:$4 sm:$0xff]   ;;  %v2238_v3 = vld [vmem:[#allocation9 + $0x174] ss:$8 sps:$4 sm:$0xff]  }
 0x11e   :  { %1128 = vmatprep.subr.bf16.mxu0 %v2124_v4  ;;  %1171 = vmatprep.subr.bf16.mxu1 %v2127_v5  ;;  %v2203_v4 = vld [vmem:[#allocation9 + $0x20] ss:$8 sps:$4 sm:$0xff]  }
 0x11f   :  { %v2239_v5 = vld [vmem:[#allocation9 + $0x160] ss:$8 sps:$4 sm:$0xff]  }
 0x121   :  { %1129 = vmatpush1.bf16.msra.mxu0 %v2122_v6  ;;  %1172 = vmatpush1.bf16.msra.mxu1 %v2125_v7  ;;  %v2208_v6 = vld [vmem:[#allocation9 + $0x14] ss:$8 sps:$4 sm:$0xff]  }
 0x122   :  { %1130 = vmatprep.subr.bf16.mxu0 %v2130_v8  ;;  %1173 = vmatprep.subr.bf16.mxu1 %v2133_v9  ;;  %v2244_v7 = vld [vmem:[#allocation9 + $0x154] ss:$8 sps:$4 sm:$0xff]   ;;  %v2206_v8 = vld [vmem:[#allocation9 + $0x10] ss:$8 sps:$4 sm:$0xff]  }
 0x123   :  { %v2242_v9 = vld [vmem:[#allocation9 + $0x150] ss:$8 sps:$4 sm:$0xff]  }
 0x125   :  { %1131 = vmatpush1.bf16.msra.mxu0 %v2128_v10  ;;  %1174 = vmatpush1.bf16.msra.mxu1 %v2131_v17  ;;  %v2211_v10 = vld [vmem:[#allocation9 + $0x4] ss:$8 sps:$4 sm:$0xff]  }
 0x126   :  { %1132 = vmatprep.subr.bf16.mxu0 %v2136_v18  ;;  %1175 = vmatprep.subr.bf16.mxu1 %v2139_v19  ;;  %v2247_v17 = vld [vmem:[#allocation9 + $0x144] ss:$8 sps:$4 sm:$0xff]   ;;  %v2209_v18 = vld [vmem:[#allocation9] ss:$8 sps:$4 sm:$0xff]  }
 0x127   :  { %v2245_v19 = vld [vmem:[#allocation9 + $0x140] ss:$8 sps:$4 sm:$0xff]  }
 0x129   :  { %1133 = vmatpush1.bf16.msra.mxu0 %v2134_v20  ;;  %1176 = vmatpush1.bf16.msra.mxu1 %v2137_v21  ;;  %v2214_v20 = vld [vmem:[#allocation9 + $0xf4] ss:$8 sps:$4 sm:$0xff]  }
 0x12a   :  { %1134 = vmatprep.subr.bf16.mxu0 %v2142_v22  ;;  %1177 = vmatprep.subr.bf16.mxu1 %v2145_v23  ;;  %v2250_v21 = vld [vmem:[#allocation9 + $0x134] ss:$8 sps:$4 sm:$0xff]   ;;  %v2212_v22 = vld [vmem:[#allocation9 + $0xf0] ss:$8 sps:$4 sm:$0xff]  }
 0x12b   :  { %v2248_v23 = vld [vmem:[#allocation9 + $0x130] ss:$8 sps:$4 sm:$0xff]  }
 0x12d   :  { %1135 = vmatpush2.bf16.msra.mxu0 %v2140_v24  ;;  %1178 = vmatpush2.bf16.msra.mxu1 %v2143_v25  ;;  %v2217_v24 = vld [vmem:[#allocation9 + $0xe4] ss:$8 sps:$4 sm:$0xff]  }
 0x12e   :  { %1136 = vmatprep.subr.bf16.mxu0 %v2148_v26  ;;  %1179 = vmatprep.subr.bf16.mxu1 %v2151_v27  ;;  %v2253_v25 = vld [vmem:[#allocation9 + $0x124] ss:$8 sps:$4 sm:$0xff]   ;;  %v2215_v26 = vld [vmem:[#allocation9 + $0xe0] ss:$8 sps:$4 sm:$0xff]  }
 0x12f   :  { %v2251_v27 = vld [vmem:[#allocation9 + $0x120] ss:$8 sps:$4 sm:$0xff]  }
 0x131   :  { %1137 = vmatpush2.bf16.msra.mxu0 %v2146_v28  ;;  %1180 = vmatpush2.bf16.msra.mxu1 %v2149_v29  ;;  %v2220_v28 = vld [vmem:[#allocation9 + $0xd4] ss:$8 sps:$4 sm:$0xff]  }
 0x132   :  { %1138 = vmatprep.subr.bf16.mxu0 %v2154_v30  ;;  %1181 = vmatprep.subr.bf16.mxu1 %v2157_v31  ;;  %v2256_v29 = vld [vmem:[#allocation9 + $0x114] ss:$8 sps:$4 sm:$0xff]   ;;  %v2218_v30 = vld [vmem:[#allocation9 + $0xd0] ss:$8 sps:$4 sm:$0xff]  }
 0x133   :  { %v2254_v31 = vld [vmem:[#allocation9 + $0x110] ss:$8 sps:$4 sm:$0xff]  }
 0x135   :  { %1139 = vmatpush2.bf16.msra.mxu0 %v2152_v32  ;;  %1182 = vmatpush2.bf16.msra.mxu1 %v2155_v33  ;;  %v2223_v32 = vld [vmem:[#allocation9 + $0xc4] ss:$8 sps:$4 sm:$0xff]  }
 0x136   :  { %1140 = vmatprep.subr.bf16.mxu0 %v2160_v34  ;;  %1183 = vmatprep.subr.bf16.mxu1 %v2163_v35  ;;  %v2259_v33 = vld [vmem:[#allocation9 + $0x104] ss:$8 sps:$4 sm:$0xff]   ;;  %v2221_v34 = vld [vmem:[#allocation9 + $0xc0] ss:$8 sps:$4 sm:$0xff]  }
 0x137   :  { %v2257_v35 = vld [vmem:[#allocation9 + $0x100] ss:$8 sps:$4 sm:$0xff]  }
 0x139   :  { %1141 = vmatpush2.bf16.msra.mxu0 %v2158_v36  ;;  %1184 = vmatpush2.bf16.msra.mxu1 %v2161_v37  ;;  %v2226_v36 = vld [vmem:[#allocation9 + $0xb4] ss:$8 sps:$4 sm:$0xff]  }
 0x13a   :  { %1142 = vmatprep.subr.bf16.mxu0 %v2166_v38  ;;  %1185 = vmatprep.subr.bf16.mxu1 %v2169_v39  ;;  %v2262_v37 = vld [vmem:[#allocation9 + $0x1f4] ss:$8 sps:$4 sm:$0xff]   ;;  %v2224_v38 = vld [vmem:[#allocation9 + $0xb0] ss:$8 sps:$4 sm:$0xff]  }
 0x13b   :  { %v2260_v39 = vld [vmem:[#allocation9 + $0x1f0] ss:$8 sps:$4 sm:$0xff]  }
 0x13d   :  { %1143 = vmatpush2.bf16.msra.mxu0 %v2164_v40  ;;  %1186 = vmatpush2.bf16.msra.mxu1 %v2167_v41  ;;  %v2229_v40 = vld [vmem:[#allocation9 + $0xa4] ss:$8 sps:$4 sm:$0xff]  }
 0x13e   :  { %1144 = vmatprep.subr.bf16.mxu0 %v2172_v42  ;;  %1187 = vmatprep.subr.bf16.mxu1 %v2175_v43  ;;  %v2265_v41 = vld [vmem:[#allocation9 + $0x1e4] ss:$8 sps:$4 sm:$0xff]   ;;  %v2227_v42 = vld [vmem:[#allocation9 + $0xa0] ss:$8 sps:$4 sm:$0xff]  }
 0x13f   :  { %v2263_v43 = vld [vmem:[#allocation9 + $0x1e0] ss:$8 sps:$4 sm:$0xff]  }
 0x141   :  { %1145 = vmatpush2.bf16.msra.mxu0 %v2170_v44  ;;  %1188 = vmatpush2.bf16.msra.mxu1 %v2173_v45  ;;  %v2232_v44 = vld [vmem:[#allocation9 + $0x94] ss:$8 sps:$4 sm:$0xff]  }
 0x142   :  { %1146 = vmatprep.subr.bf16.mxu0 %v2178_v46  ;;  %1189 = vmatprep.subr.bf16.mxu1 %v2181_v47  ;;  %v2268_v45 = vld [vmem:[#allocation9 + $0x1d4] ss:$8 sps:$4 sm:$0xff]   ;;  %v2230_v46 = vld [vmem:[#allocation9 + $0x90] ss:$8 sps:$4 sm:$0xff]  }
 0x143   :  { %v2266_v47 = vld [vmem:[#allocation9 + $0x1d0] ss:$8 sps:$4 sm:$0xff]  }
 0x145   :  { %1147 = vmatpush2.bf16.msra.mxu0 %v2176_v48  ;;  %1190 = vmatpush2.bf16.msra.mxu1 %v2179_v49  ;;  %v2235_v48 = vld [vmem:[#allocation9 + $0x84] ss:$8 sps:$4 sm:$0xff]  }
 0x146   :  { %1148 = vmatprep.subr.bf16.mxu0 %v2184_v52  ;;  %1191 = vmatprep.subr.bf16.mxu1 %v2187_v53  ;;  %v2271_v49 = vld [vmem:[#allocation9 + $0x1c4] ss:$8 sps:$4 sm:$0xff]   ;;  %v2233_v52 = vld [vmem:[#allocation9 + $0x80] ss:$8 sps:$4 sm:$0xff]  }
 0x147   :  { %v2269_v53 = vld [vmem:[#allocation9 + $0x1c0] ss:$8 sps:$4 sm:$0xff]  }
 0x149   :  { %1149 = vmatpush2.bf16.msra.mxu0 %v2182_v54  ;;  %1192 = vmatpush2.bf16.msra.mxu1 %v2185_v55  ;;  %v2274_v54 = vld [vmem:[#allocation9 + $0x1b4] ss:$8 sps:$4 sm:$0xff]   ;;  %v2272_v55 = vld [vmem:[#allocation9 + $0x1b0] ss:$8 sps:$4 sm:$0xff]  }
 0x14a   :  { %1612 = vmatprep.subr.bf16.mxu0 %v2190_v56  ;;  %1655 = vmatprep.subr.bf16.mxu1 %v2238_v3  ;;  %v2277_v56 = vld [vmem:[#allocation9 + $0x1a4] ss:$8 sps:$4 sm:$0xff]  }
 0x14c   :  { %1151 = vmatmul.mubr.bf16.vlgmr.msra.gmra.mxu0 %v2494_v50  ;;  %1194 = vmatmul.mubr.bf16.vlgmr.msra.gmra.mxu1 %v2496_v51  ;;  %v2236_v50 = vld [vmem:[#allocation9 + $0x170] ss:$8 sps:$4 sm:$0xff]   ;;  %v2241_v51 = vld [vmem:[#allocation9 + $0x164] ss:$8 sps:$4 sm:$0xff]  }
 0x14d   :  { %1613 = vmatpush1.bf16.msra.mxu0 %v2188_v57  ;;  %1656 = vmatpush1.bf16.msra.mxu1 %v2236_v50  ;;  %v2275_v57 = vld [vmem:[#allocation9 + $0x1a0] ss:$8 sps:$4 sm:$0xff]  }
 0x14e   :  { %1614 = vmatprep.subr.bf16.mxu0 %v2193_v58  ;;  %1657 = vmatprep.subr.bf16.mxu1 %v2241_v51  ;;  %v2280_v58 = vld [vmem:[#allocation9 + $0x194] ss:$8 sps:$4 sm:$0xff]  }
 0x151   :  { %1615 = vmatpush1.bf16.msra.mxu0 %v2191_v59  ;;  %1658 = vmatpush1.bf16.msra.mxu1 %v2239_v5  ;;  %v2278_v59 = vld [vmem:[#allocation9 + $0x190] ss:$8 sps:$4 sm:$0xff]  }
 0x152   :  { %1616 = vmatprep.subr.bf16.mxu0 %v2196_v60  ;;  %1659 = vmatprep.subr.bf16.mxu1 %v2244_v7  ;;  %v2283_v60 = vld [vmem:[#allocation9 + $0x184] ss:$8 sps:$4 sm:$0xff]  }
 0x155   :  { %1617 = vmatpush1.bf16.msra.mxu0 %v2194_v61  ;;  %1660 = vmatpush1.bf16.msra.mxu1 %v2242_v9  ;;  %v2281_v61 = vld [vmem:[#allocation9 + $0x180] ss:$8 sps:$4 sm:$0xff]  }
 0x156   :  { %1618 = vmatprep.subr.bf16.mxu0 %v2199_v62  ;;  %1661 = vmatprep.subr.bf16.mxu1 %v2247_v17  ;;  %v370_v62 = vld [vmem:[%s2533_s4] sm:$0xf] }
 0x159   :  { %1619 = vmatpush1.bf16.msra.mxu0 %v2197_v63  ;;  %1662 = vmatpush1.bf16.msra.mxu1 %v2245_v19  ;;  %v379_v63 = vrot.slane %v370_v62, %v2477_v13 }
 0x15a   :  { %1620 = vmatprep.subr.bf16.mxu0 %v2202_v0  ;;  %1663 = vmatprep.subr.bf16.mxu1 %v2250_v21  ;;  %v375_v0 = vrot.slane %v370_v62, %v2481_v15 }
 0x15d   :  { %1621 = vmatpush1.bf16.msra.mxu0 %v2200_v1  ;;  %1664 = vmatpush1.bf16.msra.mxu1 %v2248_v23 }
 0x15e   :  { %1622 = vmatprep.subr.bf16.mxu0 %v2205_v2  ;;  %1665 = vmatprep.subr.bf16.mxu1 %v2253_v25 }
 0x161   :  { %1623 = vmatpush1.bf16.msra.mxu0 %v2203_v4  ;;  %1666 = vmatpush1.bf16.msra.mxu1 %v2251_v27  ;;  %v387_v27 = vrot.slane %v370_v62, %v114_v14 }
 0x162   :  { %1624 = vmatprep.subr.bf16.mxu0 %v2208_v6  ;;  %1667 = vmatprep.subr.bf16.mxu1 %v2256_v29 }
 0x165   :  { %1625 = vmatpush1.bf16.msra.mxu0 %v2206_v8  ;;  %1668 = vmatpush1.bf16.msra.mxu1 %v2254_v31 }
 0x166   :  { %1626 = vmatprep.subr.bf16.mxu0 %v2211_v10  ;;  %1669 = vmatprep.subr.bf16.mxu1 %v2259_v33 }
 0x169   :  { %1627 = vmatpush1.bf16.msra.mxu0 %v2209_v18  ;;  %1670 = vmatpush1.bf16.msra.mxu1 %v2257_v35 }
 0x16a   :  { %1628 = vmatprep.subr.bf16.mxu0 %v2214_v20  ;;  %1671 = vmatprep.subr.bf16.mxu1 %v2262_v37 }
 0x16d   :  { %1629 = vmatpush2.bf16.msra.mxu0 %v2212_v22  ;;  %1672 = vmatpush2.bf16.msra.mxu1 %v2260_v39 }
 0x16e   :  { %1630 = vmatprep.subr.bf16.mxu0 %v2217_v24  ;;  %1673 = vmatprep.subr.bf16.mxu1 %v2265_v41 }
 0x171   :  { %1631 = vmatpush2.bf16.msra.mxu0 %v2215_v26  ;;  %1674 = vmatpush2.bf16.msra.mxu1 %v2263_v43 }
 0x172   :  { %1632 = vmatprep.subr.bf16.mxu0 %v2220_v28  ;;  %1675 = vmatprep.subr.bf16.mxu1 %v2268_v45  ;;  %v383_v28 = vrot.slane %v370_v62, %v2484_v16 }
 0x175   :  { %1633 = vmatpush2.bf16.msra.mxu0 %v2218_v30  ;;  %1676 = vmatpush2.bf16.msra.mxu1 %v2266_v47 }
 0x176   :  { %1634 = vmatprep.subr.bf16.mxu0 %v2223_v32  ;;  %1677 = vmatprep.subr.bf16.mxu1 %v2271_v49 }
 0x179   :  { %1635 = vmatpush2.bf16.msra.mxu0 %v2221_v34  ;;  %1678 = vmatpush2.bf16.msra.mxu1 %v2269_v53 }
 0x17a   :  { %1636 = vmatprep.subr.bf16.mxu0 %v2226_v36  ;;  %1679 = vmatprep.subr.bf16.mxu1 %v2274_v54  ;;  %v1702_v54 = vld [vmem:[%s2536_s7] sm:$0x3] }
 0x17d   :  { %1637 = vmatpush2.bf16.msra.mxu0 %v2224_v38  ;;  %1680 = vmatpush2.bf16.msra.mxu1 %v2272_v55  ;;  %v1280_v55 = vld [vmem:[%s2535_s6] sm:$0x3]  ;;  %s2401_s6 = smov [#allocation11]  }
 0x17e   :  { %1638 = vmatprep.subr.bf16.mxu0 %v2229_v40  ;;  %1681 = vmatprep.subr.bf16.mxu1 %v2277_v56  ;;  %s1769_s7 = sshll.u32 %s2401_s6, 4  ;;  %s1770_s7 = int_to_ptr.vmem [resolvable:$true] %s1769_s7 }
 0x17f   :  { %s2364_s15 = scalar_lea.vmem %s1770_s7, 16  ;;  %s2368_s8 = scalar_lea.vmem %s1770_s7, 32 }
 0x180   :  { %p2365_p6 = scmp.ne.s32.totalorder %s1770_s7, %s2364_s15  ;;  %p2369_p7 = scmp.lt.s32.totalorder %s1770_s7, %s1770_s7 }
 0x181   :  { %1639 = vmatpush2.bf16.msra.mxu0 %v2227_v42  ;;  %1682 = vmatpush2.bf16.msra.mxu1 %v2275_v57  ;;  %v1703_v57 = vunpack.c.l.bf16 %v1702_v54  ;;  %p2370_p8 = scmp.lt.s32.totalorder %s2368_s8, %s2364_s15 }
 0x182   :  { %1640 = vmatprep.subr.bf16.mxu0 %v2232_v44  ;;  %1683 = vmatprep.subr.bf16.mxu1 %v2280_v58  ;;  %v1285_v58 = vrot.slane %v1280_v55, %v2481_v15 }
 0x183   :  { %p2371_p9 = por %p2370_p8, %p2369_p7 }
 0x185   :  { %1641 = vmatpush2.bf16.msra.mxu0 %v2230_v46  ;;  %1684 = vmatpush2.bf16.msra.mxu1 %v2278_v59  ;;  %v1289_v59 = vrot.slane %v1280_v55, %v2477_v13  ;;  %p2372_p10 = pnand %p2371_p9, %p2365_p6 }
 0x186   :  { %1642 = vmatprep.subr.bf16.mxu0 %v2235_v48  ;;  %1685 = vmatprep.subr.bf16.mxu1 %v2283_v60 }
 0x189   :  { %1643 = vmatpush2.bf16.msra.mxu0 %v2233_v52  ;;  %1686 = vmatpush2.bf16.msra.mxu1 %v2281_v61  ;;  %v1733_v52 = vld [vmem:[#allocation2] sm:$0x1]  ;;  %v1708_v61 = vrot.slane %v1703_v57, %v2481_v15 }
 0x18a   :  { %1736 = vperm.xlu1 %1988, %v1733_v52  }
 0x1cc   :  { %v1066_v1 = vpop.f32.mrf.mxu0  ;;  %v1109_v2 = vpop.f32.mrf.mxu1 }
 0x1cd   :  { %v1067_v4 = vadd.f32 %v1066_v1, %v375_v0 }
 0x1ce   :  { %v1068_v3 = vpop.f32.mrf.mxu0  ;;  %v1111_v50 = vpop.f32.mrf.mxu1 }
 0x1cf   :  { %v1069_v51 = vadd.f32 %v1068_v3, %v379_v63  ;;  %v1110_v18 = vadd.f32 %v1109_v2, %v1067_v4 }
 0x1d0   :  { %v1070_v5 = vpop.f32.mrf.mxu0  ;;  %v1113_v6 = vpop.f32.mrf.mxu1 }
 0x1d1   :  { %v1071_v7 = vadd.f32 %v1070_v5, %v375_v0  ;;  %v1112_v9 = vadd.f32 %v1111_v50, %v1069_v51  ;;  %v1204_v24 = vmax.f32 %v1110_v18, 0.0  ;;  %v1718_v51 = vrot.slane %v1708_v61, %v2481_v15 }
 0x1d2   :  { %v1072_v8 = vpop.f32.mrf.mxu0  ;;  %v1115_v19 = vpop.f32.mrf.mxu1 }
 0x1d3   :  { %v1114_v10 = vadd.f32 %v1113_v6, %v1071_v7  ;;  %v1073_v17 = vadd.f32 %v1072_v8, %v379_v63  ;;  %v1205_v22 = vmax.f32 %v1112_v9, 0.0  ;;  %v1712_v63 = vrot.slane %v1703_v57, %v2484_v16 }
 0x1d5   :  { %v1116_v20 = vadd.f32 %v1115_v19, %v1073_v17  ;;  %v1208_v21 = vmax.f32 %v1114_v10, 0.0  ;;  %v1722_v7 = vrot.slane %v1712_v63, %v2481_v15 }
 0x1d7   :  { %v1209_v23 = vmax.f32 %v1116_v20, 0.0  ;;  %v1212_v26 = vpack.c.bf16 %v1208_v21, %v1204_v24 }
 0x1d9   :  { %v1213_v25 = vpack.c.bf16 %v1209_v23, %v1205_v22 }
 0x1db   :  { %1644 = vmatprep.mubr.bf16.mxu0 %v1213_v25 }
 0x1dc   :  { %1645 = vmatmul.mubr.bf16.vlgmr.msra.gmra.mxu0 %v1212_v26 }
 0x205   :  { %v1737_v26 = vpop.permute.xlu1 %1736 }
 0x20c   :  { %v1152_v29 = vpop.f32.mrf.mxu0  ;;  %v1195_v30 = vpop.f32.mrf.mxu1 }
 0x20d   :  { %v1153_v34 = vadd.f32 %v1152_v29, %v383_v28 }
 0x20e   :  { %v1154_v31 = vpop.f32.mrf.mxu0  ;;  %v1197_v32 = vpop.f32.mrf.mxu1 }
 0x20f   :  { %v1155_v33 = vadd.f32 %v1154_v31, %v387_v27  ;;  %v1196_v42 = vadd.f32 %v1195_v30, %v1153_v34 }
 0x210   :  { %v1156_v35 = vpop.f32.mrf.mxu0  ;;  %v1199_v36 = vpop.f32.mrf.mxu1 }
 0x211   :  { %v1157_v37 = vadd.f32 %v1156_v35, %v383_v28  ;;  %v1198_v39 = vadd.f32 %v1197_v32, %v1155_v33  ;;  %v1206_v47 = vmax.f32 %v1196_v42, 0.0  ;;  %v1742_v28 = vrot.slane %v1737_v26, %v2481_v15 }
 0x212   :  { %v1158_v38 = vpop.f32.mrf.mxu0  ;;  %v1201_v43 = vpop.f32.mrf.mxu1 }
 0x213   :  { %v1200_v40 = vadd.f32 %v1199_v36, %v1157_v37  ;;  %v1159_v41 = vadd.f32 %v1158_v38, %v387_v27  ;;  %v1207_v14 = vmax.f32 %v1198_v39, 0.0  ;;  %v1748_v27 = vand.u32 127, %v100_v11 }
 0x215   :  { %v1202_v44 = vadd.f32 %v1201_v43, %v1159_v41  ;;  %v1210_v45 = vmax.f32 %v1200_v40, 0.0  ;;  %v1753_v29 = vadd.s32 4294967288, %v1748_v27  ;;  %v1751_v31 = vsub.s32 %v1748_v27, %v2474_v12 }
 0x217   :  { %v1211_v46 = vmax.f32 %v1202_v44, 0.0  ;;  %v1214_v49 = vpack.c.bf16 %v1210_v45, %v1206_v47  ;;  %v1756_v33 = vsub.s32 %v1753_v29, %v2474_v12 }
 0x219   :  { %v1215_v48 = vpack.c.bf16 %v1211_v46, %v1207_v14 }
 0x21b   :  { %1687 = vmatprep.mubr.bf16.mxu1 %v1215_v48 }
 0x21c   :  { %1688 = vmatmul.mubr.bf16.vlgmr.msra.gmra.mxu1 %v1214_v49 }
 0x29c   :  { %v1646_v53 = vpop.f32.mrf.mxu0 }
 0x29d   :  { %v1647_v62 = vadd.f32 %v1646_v53, %v1285_v58 }
 0x29e   :  { %v1648_v56 = vpop.f32.mrf.mxu0 }
 0x29f   :  { %v1649_v1 = vadd.f32 %v1648_v56, %v1289_v59 }
 0x2a0   :  { %v1650_v60 = vpop.f32.mrf.mxu0 }
 0x2a1   :  { %v1651_v4 = vadd.f32 %v1650_v60, %v1285_v58 }
 0x2a2   :  { %v1652_v3 = vpop.f32.mrf.mxu0 }
 0x2a3   :  { %v1653_v13 = vadd.f32 %v1652_v3, %v1289_v59 }
 0x2dc   :  { %v1689_v0 = vpop.f32.mrf.mxu1 }
 0x2dd   :  { %v1690_v2 = vadd.f32 %v1689_v0, %v1647_v62 }
 0x2de   :  { %v1691_v50 = vpop.f32.mrf.mxu1 }
 0x2df   :  { %v1698_v5 = vmax.f32 %v1690_v2, 0.0  ;;  %v1692_v6 = vadd.f32 %v1691_v50, %v1649_v1 }
 0x2e0   :  { %v1693_v8 = vpop.f32.mrf.mxu1 }
 0x2e1   :  { %v1699_v9 = vmax.f32 %v1692_v6, 0.0  ;;  %v1694_v10 = vadd.f32 %v1693_v8, %v1651_v4  ;;  %v1723_v16 = vmul.f32 %v1718_v51, %v1698_v5 }
 0x2e2   :  { %v1695_v17 = vpop.f32.mrf.mxu1 }
 0x2e3   :  { %v1700_v18 = vmax.f32 %v1694_v10, 0.0  ;;  %v1696_v19 = vadd.f32 %v1695_v17, %v1653_v13  ;;  %v1724_v20 = vmul.f32 %v1722_v7, %v1699_v9 }
 0x2e5   :  { %v1701_v21 = vmax.f32 %v1696_v19, 0.0  ;;  %v1727_v22 = vadd.f32 %v1724_v20, %v1723_v16  ;;  %v1725_v23 = vmul.f32 %v1718_v51, %v1700_v18 }
 0x2e7   :  { %v1726_v24 = vmul.f32 %v1722_v7, %v1701_v21  ;;  %1728 = vadd.xlane.f32.xlu0 %v1727_v22 }
 0x2e9   :  { %v1730_v25 = vadd.f32 %v1726_v24, %v1725_v23 }
 0x2eb   :  { %1731 = vadd.xlane.f32.xlu0 %v1730_v25 }
 0x370   :  { %v1729_v30 = vpop.xlane.xlu0 %1728 }
 0x371   :  { %v1743_v32 = vadd.f32 %v1742_v28, %v1729_v30 }
 0x373   :  { %v1752_v36 = vrot.slane %v1743_v32, %v1751_v31 }
 0x374   :  { %v1732_v34 = vpop.xlane.xlu0 %1731 }
 0x375   :  { %v1744_v35 = vadd.f32 %v1742_v28, %v1732_v34 }
 0x377   :  { %v1757_v37 = vrot.slane %v1744_v35, %v1756_v33 }
 0x379   :  { %v1759_v38 = vsel %vm1758_vm1, %v1757_v37, %v1752_v36 }
 0x37a   :  { %1762 = vst.msk [vmem:[#allocation11] sm:$0x1] %vm1761_vm2, %v1759_v38 }
 0x37b   :  { %2375 = shalt.err (!%p2372_p10)
}
 0x37c   :  { %1772 = dma.vmem_to_hbm [thread:$0]  %s1770_s7, 16, %s2538_s9, [#allocation5]  }
 0x37d   :  { %2390 = dma.done.wait [#allocation5], 16  }
 0x37e   :  { %2391 = vsyncadd [#allocation5], 4294967280 }
 0x37f   :  { %1776 = vsyncpa [#allocation4], 1 }
 0x380   :  { %1777 = vsyncpa [#allocation7], 1 }
 0x381   :  { %1778 = vsyncpa [#allocation10], 1 }
 0x382   :  { %1779 = vsyncpa [#allocation5], 1 }

</bundles_post_ra>
